<compile_context>
chip_gen: v5e
topology: v5e:2x2
jax: 0.10.0
libtpu: 0.0.40
codegen_flags: <defaults>
</compile_context>

<pallas_src>
import math

import jax
import jax.numpy as jnp
from jax.experimental import pallas as pl
from jax.experimental.pallas import tpu as pltpu


def make_positional_encoding(d_model: int, max_len: int = 100) -> jnp.ndarray:
    """Deterministic sinusoidal PE table, identical to the PyTorch __init__."""
    position = jnp.arange(0, max_len, dtype=jnp.float32)[:, None]          # [max_len, 1]
    div_term = jnp.exp(
        jnp.arange(0, d_model, 2, dtype=jnp.float32) * (-math.log(10000.0) / d_model)
    )                                                                      # [ceil(d_model/2)]
    pe = jnp.zeros((max_len, d_model), dtype=jnp.float32)
    pe = pe.at[:, 0::2].set(jnp.sin(position * div_term))
    # slice div_term so odd d_model does not shape-mismatch (even d_model unchanged)
    pe = pe.at[:, 1::2].set(jnp.cos(position * div_term[: d_model // 2]))
    return pe


def _pe_add_kernel(x_ref, pe_ref, o_ref):
    # x_ref / o_ref: (tb, tc);  pe_ref: (1, tc) -- broadcast add over rows.
    o_ref[...] = x_ref[...] + pe_ref[...]


def _pick_tiles(B: int, SD: int, itemsize: int, target_bytes: int = 2 * 1024 * 1024):
    """Choose (tb, tc) so blocks are ~target_bytes, lane-dense, and exact divisors.

    Keeps 2x(in) + 2x(out) + 2x(pe) double-buffered blocks well under the
    default scoped-VMEM limit on v5e/v6e/v7x.
    """
    target_elems = max(128, target_bytes // itemsize)

    # Row tile: must be a multiple of 8, or the full extent B.
    tb = B if B % 8 else 8

    # Column tile: multiple of 128 that divides SD (lane-dense, unmasked vst);
    # fall back to the full extent if SD is not a multiple of 128.
    if SD % 128 == 0:
        col_budget = max(128, target_elems // tb)
        n = SD // 128
        tc = 128
        for k in range(1, n + 1):
            cand = 128 * k
            if n % k == 0 and cand <= col_budget:
                tc = cand
    else:
        tc = SD

    # If columns ended up small, grow the row tile to keep blocks chunky
    # (fewer grid steps -> less per-step fixed overhead).
    if B % 8 == 0:
        m = B // 8
        for k in range(1, m + 1):
            cand = 8 * k
            if m % k == 0 and cand * tc <= target_elems:
                tb = cand

    return tb, tc


def positional_encoding_forward(x: jnp.ndarray, pe: jnp.ndarray) -> jnp.ndarray:
    """x: [B, S, D]; pe: [max_len, D]. Returns x + pe[:S] (broadcast over batch)."""
    B, S, D = x.shape
    assert S <= pe.shape[0], "sequence length exceeds max_len of the PE table"

    SD = S * D
    itemsize = jnp.dtype(x.dtype).itemsize

    # Flatten to a lane-dense 2-D view: x2[b, s*D + d] == x[b, s, d],
    # pe2[0, s*D + d] == pe[s, d]  -> the broadcast add is preserved exactly.
    x2 = x.reshape(B, SD)
    pe2 = pe[:S, :].astype(x.dtype).reshape(1, SD)

    tb, tc = _pick_tiles(B, SD, itemsize)
    grid = (B // tb, SD // tc)

    out2 = pl.pallas_call(
        _pe_add_kernel,
        out_shape=jax.ShapeDtypeStruct((B, SD), x.dtype),
        grid=grid,
        in_specs=[
            pl.BlockSpec((tb, tc), lambda i, j: (i, j)),   # x tile
            pl.BlockSpec((1, tc), lambda i, j: (0, j)),    # pe tile (reused across batch)
        ],
        out_specs=pl.BlockSpec((tb, tc), lambda i, j: (i, j)),
        input_output_aliases={0: 0},                       # in-place add into x's buffer
        cost_estimate=pl.CostEstimate(
            flops=B * SD,
            transcendentals=0,
            bytes_accessed=(2 * B * SD + SD) * itemsize,
        ),
        compiler_params=pltpu.CompilerParams(
            dimension_semantics=("parallel", "parallel"),
        ),
    )(x2, pe2)

    return out2.reshape(B, S, D)


# TODO(synk): in a full model, fuse this add into the adjacent embedding /
# dropout kernel and run in bf16 -- that removes an entire HBM round trip of
# the activation tensor, which dwarfs any in-kernel tuning.


if __name__ == "__main__":
    key = jax.random.PRNGKey(0)
    B, S, D = 2, 8, 32
    max_len = 100

    x = jax.random.normal(key, (B, S, D), dtype=jnp.float32)
    pe = make_positional_encoding(D, max_len)

    # reference (computed before the call; the kernel aliases its own temp buffer)
    ref = x + pe[:S, :][None, :, :]

    out = jax.jit(positional_encoding_forward)(x, pe)
    out = jax.block_until_ready(out)

    assert out.shape == (B, S, D)
    assert jnp.allclose(out, ref, atol=1e-6), "mismatch vs reference"

    print("KERNEL_OK")
</pallas_src>

<mosaic_0001>
module attributes {stable_mosaic.version = 11 : i64} {
  func.func @_pe_add_kernel(%arg0: i32, %arg1: i32, %arg2: memref<2x256xf32, #tpu.memory_space<vmem>>, %arg3: memref<1x256xf32, #tpu.memory_space<vmem>>, %arg4: memref<2x256xf32, #tpu.memory_space<vmem>>) attributes {dimension_semantics = [#tpu.dimension_semantics<parallel>, #tpu.dimension_semantics<parallel>], iteration_bounds = array<i64: 1, 1>, scalar_prefetch = 0 : i64, scratch_operands = 0 : i64, tpu.core_type = #tpu.core_type<tc>, window_params = [{transform_indices = @transform_0, window_bounds = array<i64: 2, 256>}, {transform_indices = @transform_1, window_bounds = array<i64: 1, 256>}, {transform_indices = @transform_2, window_bounds = array<i64: 2, 256>}]} {
    %c0 = arith.constant 0 : index
    %c0_0 = arith.constant 0 : index
    %0 = vector.load %arg2[%c0, %c0_0] : memref<2x256xf32, #tpu.memory_space<vmem>>, vector<2x256xf32>
    %c0_1 = arith.constant 0 : index
    %c0_2 = arith.constant 0 : index
    %1 = vector.load %arg3[%c0_1, %c0_2] : memref<1x256xf32, #tpu.memory_space<vmem>>, vector<1x256xf32>
    %2 = vector.broadcast %1 : vector<1x256xf32> to vector<2x256xf32>
    %3 = arith.addf %0, %2 : vector<2x256xf32>
    %c0_3 = arith.constant 0 : index
    %c0_4 = arith.constant 0 : index
    %4 = vector.load %arg4[%c0_3, %c0_4] : memref<2x256xf32, #tpu.memory_space<vmem>>, vector<2x256xf32>
    tpu.vector_store %arg4[%c0_3, %c0_4], %3 {strides = array<i32>} : memref<2x256xf32, #tpu.memory_space<vmem>>, vector<2x256xf32>,
    return
  }
  func.func @transform_0(%arg0: i32, %arg1: i32) -> (i32, i32) {
    %c0_i32 = arith.constant 0 : i32
    return %arg0, %arg1 : i32, i32
  }
  func.func @transform_1(%arg0: i32, %arg1: i32) -> (i32, i32) {
    %c0_i32 = arith.constant 0 : i32
    %c0_i32_0 = arith.constant 0 : i32
    return %c0_i32, %arg1 : i32, i32
  }
  func.func @transform_2(%arg0: i32, %arg1: i32) -> (i32, i32) {
    %c0_i32 = arith.constant 0 : i32
    return %arg0, %arg1 : i32, i32
  }
}

</mosaic_0001>

<bundles_post_ra>
// kernel: positional_encoding_forward.1
= control target key start
LH: loop header
LB: loop body
LE: loop exit
PB: predicated region body
PF: predicated region fallthrough
CT: control target
= control target key end

     0   :  { %vm17_vm0 = vcmask 1041408   ;;  %s50_s1 = inlined_call_operand.vmem [shape: f32[1,256], index: 1, kind: input, shape index: {}]   ;;  %s51_s0 = inlined_call_operand.vmem [shape: f32[2,256], index: 0, kind: input, shape index: {}, may-alias: {0,2}]   ;;  %s52_s2 = inlined_call_operand.vmem [shape: f32[2,256], index: 2, kind: output, shape index: {}, may-alias: {0,2}]  }
   0x1   :  { %v12_v0 = vld [vmem:[%s50_s1] sm:$0x3] }
   0x2   :  { %v14_v1 = vperm.slane %v12_v0, 0  ;;  %v15_v2 = vperm.slane %v12_v0, 1  ;;  %v11_v3 = vld [vmem:[%s51_s0] sm:$0xf] }
   0x4   :  { %v16_v4 = vrot.slane %v15_v2, 6 }
   0x6   :  { %v18_v5 = vsel %vm17_vm0, %v14_v1, %v16_v4 }
   0x7   :  { %v20_v6 = vadd.f32 %v18_v5, %v11_v3 }
   0x9   :  { %21 = vst [vmem:[%s52_s2] sm:$0xf] %v20_v6 }

</bundles_post_ra>
